<compile_context>
chip_gen: v6e
topology: v6e:2x2x1
jax: 0.10.0
libtpu: 0.0.40
codegen_flags: <defaults>
</compile_context>

<pallas_src>
import jax
import jax.numpy as jnp
from jax.experimental import pallas as pl
from jax.experimental.pallas import tpu as pltpu


def _output_transition_kernel(x_ref, w_ref, b_ref, o_ref):
    # x_ref: (1, Cin, St) VMEM   w_ref: (Cin, Cout, 1) VMEM
    # b_ref: (Cout, 1)    VMEM   o_ref: (1, Cout, St)  VMEM
    cin = x_ref.shape[1]

    x = x_ref[0].astype(jnp.float32)            # (Cin, St)

    # Unrolled channel contraction on the VPU: (1,St) * (Cout,1) -> (Cout,St).
    # (For large channel counts >=64 an MXU jnp.dot path would be preferable.)
    acc = x[0:1, :] * w_ref[0]
    for c in range(1, cin):
        acc = acc + x[c:c + 1, :] * w_ref[c]
    acc = acc + b_ref[...]                      # bias broadcast over lanes

    # Softmax over the channel (sublane) axis -- lane axis stays dense.
    m = jnp.max(acc, axis=0, keepdims=True)     # (1, St)
    e = jnp.exp(acc - m)                        # (Cout, St)
    denom = jnp.sum(e, axis=0, keepdims=True)   # (1, St)
    o_ref[0] = (e * pl.reciprocal(denom, approx=False)).astype(o_ref.dtype)


def output_transition(x_ncdhw, weight, bias, *, tile_s=4096):
    """x_ncdhw: (N, Cin, D, H, W); weight: (Cout, Cin, 1, 1, 1); bias: (Cout,)."""
    N, Cin, D, H, W = x_ncdhw.shape
    Cout = weight.shape[0]
    S = D * H * W

    # Pure reshapes only -- no wrapper transposes (no extra HBM passes).
    x3 = x_ncdhw.reshape(N, Cin, S)
    w3 = weight.reshape(Cout, Cin).T.reshape(Cin, Cout, 1)   # 16 values, trivial
    b2 = bias.reshape(Cout, 1)

    # Spatial (lane) tile: multiple of 128 unless it spans the whole axis.
    # tile_s is the main perf knob; sweep upward (2048-32768) for large volumes.
    tile_s = min(tile_s, S)
    if tile_s < S and tile_s % 128 != 0:
        tile_s = max(128, (tile_s // 128) * 128)

    # Ragged tail: pad S up to a multiple of tile_s (padded cols sliced off below).
    S_pad = -(-S // tile_s) * tile_s
    if S_pad != S:
        x3 = jnp.pad(x3, ((0, 0), (0, 0), (0, S_pad - S)))

    grid = (N, S_pad // tile_s)

    itemsize = jnp.dtype(x_ncdhw.dtype).itemsize
    M = N * S
    cost = pl.CostEstimate(
        flops=2 * M * Cin * Cout + 5 * M * Cout,
        transcendentals=M * Cout,
        bytes_accessed=M * (Cin + Cout) * itemsize,
    )

    out3 = pl.pallas_call(
        _output_transition_kernel,
        out_shape=jax.ShapeDtypeStruct((N, Cout, S_pad), x_ncdhw.dtype),
        grid_spec=pltpu.PrefetchScalarGridSpec(
            num_scalar_prefetch=0,
            grid=grid,
            in_specs=[
                pl.BlockSpec((1, Cin, tile_s), lambda n, s: (n, 0, s)),
                pl.BlockSpec((Cin, Cout, 1), lambda n, s: (0, 0, 0)),  # weights, resident
                pl.BlockSpec((Cout, 1), lambda n, s: (0, 0)),          # bias, resident
            ],
            out_specs=pl.BlockSpec((1, Cout, tile_s), lambda n, s: (n, 0, s)),
        ),
        compiler_params=pltpu.CompilerParams(
            dimension_semantics=("parallel", "parallel")),
        cost_estimate=cost,
    )(x3, w3, b2)

    if S_pad != S:
        out3 = out3[:, :, :S]
    return out3.reshape(N, Cout, D, H, W)


if __name__ == "__main__":
    key = jax.random.PRNGKey(0)
    k_x, k_w, k_b = jax.random.split(key, 3)

    # Small shapes consistent with the module: N=2, inChans=4, outChans=4, D=4, H=W=8
    N, Cin, Cout, D, H, W = 2, 4, 4, 4, 8, 8
    x = jax.random.normal(k_x, (N, Cin, D, H, W), dtype=jnp.float32)

    # Conv3d weight shape: (Cout, Cin, 1, 1, 1); bias: (Cout,)
    weight = 0.1 * jax.random.normal(k_w, (Cout, Cin, 1, 1, 1), dtype=jnp.float32)
    bias = 0.1 * jax.random.normal(k_b, (Cout,), dtype=jnp.float32)

    out = output_transition(x, weight, bias)
    out = jax.block_until_ready(out)

    # Reference in plain JAX (1x1x1 conv == channel matmul, softmax on dim=1)
    ref_logits = jnp.einsum("ncdhw,oc->nodhw", x, weight.reshape(Cout, Cin)) \
                 + bias.reshape(1, Cout, 1, 1, 1)
    ref = jax.nn.softmax(ref_logits, axis=1)
    assert out.shape == (N, Cout, D, H, W)
    assert jnp.allclose(out, ref, atol=1e-5, rtol=1e-5)

    print("KERNEL_OK")
</pallas_src>

<mosaic_0001>
module attributes {stable_mosaic.version = 11 : i64} {
  func.func @_output_transition_kernel(%arg0: i32, %arg1: i32, %arg2: memref<1x4x256xf32, #tpu.memory_space<vmem>>, %arg3: memref<4x4x1xf32, #tpu.memory_space<vmem>>, %arg4: memref<4x1xf32, #tpu.memory_space<vmem>>, %arg5: memref<1x4x256xf32, #tpu.memory_space<vmem>>) attributes {dimension_semantics = [#tpu.dimension_semantics<parallel>, #tpu.dimension_semantics<parallel>], iteration_bounds = array<i64: 2, 1>, scalar_prefetch = 0 : i64, scratch_operands = 0 : i64, tpu.core_type = #tpu.core_type<tc>, window_params = [{transform_indices = @transform_0, window_bounds = array<i64: 1, 4, 256>}, {pipeline_mode = #tpu.pipeline_mode<synchronous>, transform_indices = @transform_1, window_bounds = array<i64: 4, 4, 1>}, {pipeline_mode = #tpu.pipeline_mode<synchronous>, transform_indices = @transform_2, window_bounds = array<i64: 4, 1>}, {transform_indices = @transform_3, window_bounds = array<i64: 1, 4, 256>}]} {
    %c0 = arith.constant 0 : index
    %c0_0 = arith.constant 0 : index
    %c0_1 = arith.constant 0 : index
    %0 = vector.load %arg2[%c0, %c0_0, %c0_1] : memref<1x4x256xf32, #tpu.memory_space<vmem>>, vector<1x4x256xf32>
    %1 = vector.shape_cast %0 : vector<1x4x256xf32> to vector<4x256xf32>
    %2 = vector.extract_strided_slice %1 {offsets = [0, 0], sizes = [1, 256], strides = [1, 1]} : vector<4x256xf32> to vector<1x256xf32>
    %c0_2 = arith.constant 0 : index
    %c0_3 = arith.constant 0 : index
    %c0_4 = arith.constant 0 : index
    %3 = vector.load %arg3[%c0_2, %c0_3, %c0_4] : memref<4x4x1xf32, #tpu.memory_space<vmem>>, vector<1x4x1xf32>
    %4 = vector.shape_cast %3 : vector<1x4x1xf32> to vector<4x1xf32>
    %5 = vector.broadcast %2 : vector<1x256xf32> to vector<4x256xf32>
    %6 = vector.broadcast %4 : vector<4x1xf32> to vector<4x256xf32>
    %7 = arith.mulf %5, %6 : vector<4x256xf32>
    %8 = vector.extract_strided_slice %1 {offsets = [1, 0], sizes = [1, 256], strides = [1, 1]} : vector<4x256xf32> to vector<1x256xf32>
    %c1 = arith.constant 1 : index
    %c0_5 = arith.constant 0 : index
    %c0_6 = arith.constant 0 : index
    %9 = vector.load %arg3[%c1, %c0_5, %c0_6] : memref<4x4x1xf32, #tpu.memory_space<vmem>>, vector<1x4x1xf32>
    %10 = vector.shape_cast %9 : vector<1x4x1xf32> to vector<4x1xf32>
    %11 = vector.broadcast %8 : vector<1x256xf32> to vector<4x256xf32>
    %12 = vector.broadcast %10 : vector<4x1xf32> to vector<4x256xf32>
    %13 = arith.mulf %11, %12 : vector<4x256xf32>
    %14 = arith.addf %7, %13 : vector<4x256xf32>
    %15 = vector.extract_strided_slice %1 {offsets = [2, 0], sizes = [1, 256], strides = [1, 1]} : vector<4x256xf32> to vector<1x256xf32>
    %c2 = arith.constant 2 : index
    %c0_7 = arith.constant 0 : index
    %c0_8 = arith.constant 0 : index
    %16 = vector.load %arg3[%c2, %c0_7, %c0_8] : memref<4x4x1xf32, #tpu.memory_space<vmem>>, vector<1x4x1xf32>
    %17 = vector.shape_cast %16 : vector<1x4x1xf32> to vector<4x1xf32>
    %18 = vector.broadcast %15 : vector<1x256xf32> to vector<4x256xf32>
    %19 = vector.broadcast %17 : vector<4x1xf32> to vector<4x256xf32>
    %20 = arith.mulf %18, %19 : vector<4x256xf32>
    %21 = arith.addf %14, %20 : vector<4x256xf32>
    %22 = vector.extract_strided_slice %1 {offsets = [3, 0], sizes = [1, 256], strides = [1, 1]} : vector<4x256xf32> to vector<1x256xf32>
    %c3 = arith.constant 3 : index
    %c0_9 = arith.constant 0 : index
    %c0_10 = arith.constant 0 : index
    %23 = vector.load %arg3[%c3, %c0_9, %c0_10] : memref<4x4x1xf32, #tpu.memory_space<vmem>>, vector<1x4x1xf32>
    %24 = vector.shape_cast %23 : vector<1x4x1xf32> to vector<4x1xf32>
    %25 = vector.broadcast %22 : vector<1x256xf32> to vector<4x256xf32>
    %26 = vector.broadcast %24 : vector<4x1xf32> to vector<4x256xf32>
    %27 = arith.mulf %25, %26 : vector<4x256xf32>
    %28 = arith.addf %21, %27 : vector<4x256xf32>
    %c0_11 = arith.constant 0 : index
    %c0_12 = arith.constant 0 : index
    %29 = vector.load %arg4[%c0_11, %c0_12] : memref<4x1xf32, #tpu.memory_space<vmem>>, vector<4x1xf32>
    %30 = vector.broadcast %29 : vector<4x1xf32> to vector<4x256xf32>
    %31 = arith.addf %28, %30 : vector<4x256xf32>
    %cst = arith.constant dense<0xFF800000> : vector<256xf32>
    %32 = vector.multi_reduction <maximumf>, %31, %cst [0] : vector<4x256xf32> to vector<256xf32>
    %33 = vector.shape_cast %32 : vector<256xf32> to vector<1x256xf32>
    %34 = vector.broadcast %33 : vector<1x256xf32> to vector<4x256xf32>
    %35 = arith.subf %31, %34 : vector<4x256xf32>
    %36 = math.exp %35 : vector<4x256xf32>
    %cst_13 = arith.constant dense<0.000000e+00> : vector<256xf32>
    %37 = vector.multi_reduction <add>, %36, %cst_13 [0] : vector<4x256xf32> to vector<256xf32>
    %38 = vector.shape_cast %37 : vector<256xf32> to vector<1x256xf32>
    %39 = tpu.reciprocal %38 : vector<1x256xf32> -> vector<1x256xf32>
    %40 = vector.broadcast %39 : vector<1x256xf32> to vector<4x256xf32>
    %41 = arith.mulf %36, %40 : vector<4x256xf32>
    %c0_14 = arith.constant 0 : index
    %c0_15 = arith.constant 0 : index
    %c0_16 = arith.constant 0 : index
    %42 = vector.load %arg5[%c0_14, %c0_15, %c0_16] : memref<1x4x256xf32, #tpu.memory_space<vmem>>, vector<1x4x256xf32>
    %43 = vector.shape_cast %42 : vector<1x4x256xf32> to vector<4x256xf32>
    %44 = vector.shape_cast %41 : vector<4x256xf32> to vector<1x4x256xf32>
    tpu.vector_store %arg5[%c0_14, %c0_15, %c0_16], %44 {strides = array<i32>} : memref<1x4x256xf32, #tpu.memory_space<vmem>>, vector<1x4x256xf32>,
    return
  }
  func.func @transform_0(%arg0: i32, %arg1: i32) -> (i32, i32, i32) {
    %c0_i32 = arith.constant 0 : i32
    %c0_i32_0 = arith.constant 0 : i32
    return %arg0, %c0_i32, %arg1 : i32, i32, i32
  }
  func.func @transform_1(%arg0: i32, %arg1: i32) -> (i32, i32, i32) {
    %c0_i32 = arith.constant 0 : i32
    %c0_i32_0 = arith.constant 0 : i32
    %c0_i32_1 = arith.constant 0 : i32
    %c0_i32_2 = arith.constant 0 : i32
    return %c0_i32, %c0_i32_0, %c0_i32_1 : i32, i32, i32
  }
  func.func @transform_2(%arg0: i32, %arg1: i32) -> (i32, i32) {
    %c0_i32 = arith.constant 0 : i32
    %c0_i32_0 = arith.constant 0 : i32
    %c0_i32_1 = arith.constant 0 : i32
    return %c0_i32, %c0_i32_0 : i32, i32
  }
  func.func @transform_3(%arg0: i32, %arg1: i32) -> (i32, i32, i32) {
    %c0_i32 = arith.constant 0 : i32
    %c0_i32_0 = arith.constant 0 : i32
    return %arg0, %c0_i32, %arg1 : i32, i32, i32
  }
}

</mosaic_0001>

<bundles_post_ra>
// kernel: tpu_custom_call.1
= control target key start
LH: loop header
LB: loop body
LE: loop exit
PB: predicated region body
PF: predicated region fallthrough
CT: control target
= control target key end

     0   :  { %8 = vsyncpa [#allocation3], 0  ;;  %s762_s0 = inlined_call_operand.vmem [shape: f32[2,4,256], index: 0, kind: input, shape index: {}]   ;;  %s763_s1 = inlined_call_operand.vmem [shape: f32[4,4,1], index: 1, kind: input, shape index: {}]   ;;  %s764_s2 = inlined_call_operand.vmem [shape: f32[4,1], index: 2, kind: input, shape index: {}]   ;;  %s765_s3 = inlined_call_operand.hbm [shape: f32[2,4,256], index: 3, kind: output, shape index: {}]  }
   0x1   :  { %10 = vsyncpa [#allocation3 + $0x1], 0  ;;  %s644_s12 = smov 0   ;;  %s646_s13 = smov 0  }
   0x2   :  { %s648_s14 = smov 0   ;;  %s650_s15 = smov 0  }
   0x3   :  { %s652_s16 = smov 0   ;;  %s654_s17 = smov 0  }
   0x4 LB: > { %s460_s18 = sadd.s32 4294967295, %s620_s17   ;;  %s461_s19 = sadd.s32 4294967294, %s620_s17   ;;  %s620_s17 = sphi %s654_s17, %s16_s17   ;;  %s616_s16 = sphi %s652_s16, %s772_s16   ;;  %s612_s15 = sphi %s650_s15, %s771_s15   ;;  %s608_s14 = sphi %s648_s14, %s770_s14   ;;  %s604_s13 = sphi %s646_s13, %s769_s13   ;;  %s600_s12 = sphi %s644_s12, %s768_s12  }
   0x5   : > { %s28_s20 = sadd.s32 1, %s616_s16  ;;  %s107_s21 = sadd.s32 1, %s608_s14 }
   0x6   : > { %p30_p0 = scmp.ge.s32.totalorder %s28_s20, 2  ;;  %p117_p1 = scmp.ne.s32.totalorder %s608_s14, %s604_s13 }
   0x7   : > { %p118_p2 = scmp.eq.s32.totalorder %s460_s18, 1  ;;  %p123_p3 = scmp.ne.s32.totalorder %s604_s13, %s600_s12 }
   0x8   : > { %s774_s20 = smov (%p30_p0, %s28_s20), 0  ;;  %p124_p5 = scmp.eq.s32.totalorder %s461_s19, 1 }
   0x9   : > { %p684_p4 = por %p118_p2, %p117_p1  ;;  %s102_s23 = ssub.s32 %s616_s16, %s774_s20 }
   0xa   : > { %p464_p6 = scmp.ge.s32.totalorder %s620_s17, 1  ;;  %p105_p7 = scmp.eq.s32.totalorder %s102_s23, 0 }
   0xb   : > { %p691_p8 = por %p124_p5, %p123_p3  ;;  %p161_p9 = scmp.lt.s32.totalorder %s620_s17, 3 }
   0xc   : > { %s697_s25 = scalar_select %p105_p7, %s608_s14, %s107_s21  }
   0xd   : > { %p162_p10 = pnand %p464_p6, %p161_p9 }
   0xe   : > { %p190_p11 = scmp.lt.s32.totalorder (!%p162_p10), %s612_s15, 1  ;;  %s186_s21 = sand.u32 (!%p162_p10), 1, %s604_s13  }
   0xf   : > { %165 = sbr.rel (%p162_p10) target bundleno = 236 (0xec), region = 32  ;;  %s465_s23 = sshll.u32 (!%p162_p10), %s186_s21, 3 }
  0x10   : > { %s477_s26 = sshll.u32 (!%p162_p10), %s612_s15, 7  ;;  %s188_s27 = scalar_lea.vmem (!%p162_p10), [#allocation2], %s465_s23 }
  0x11   : > { %s384_s28 = sshll.u32 (!%p162_p10), %s188_s27, 4  ;;  %s382_s4 = scalar_lea.hbm (!%p162_p10), %s765_s3, %s477_s26  ;;  %s385_s28 = int_to_ptr.vmem [resolvable:$true] %s384_s28 }
  0x12   : > { %s368_s5 = scalar_lea.sflag (!%p162_p10), [#allocation3], %s186_s21  ;;  %s544_s6 = scalar_lea.vmem (!%p162_p10), %s385_s28, 128 }
  0x13   : > { %p545_p12 = scmp.ne.s32.totalorder (!%p162_p10), %s385_s28, %s544_s6  ;;  %s623_s7 = smov (!%p162_p10), [#allocation2]  }
  0x14   : > { %v469_v0 = vld [vmem:[%s763_s1 + $0x8] sm:$0xf]  ;;  %v201_v1 = vld [vmem:[%s763_s1] sm:$0xf]  ;;  %v622_v2 = vmov 0   ;;  %s191_s9 = scalar_select %p190_p11, %s612_s15, 1  ;;  %v203_v6 = vlaneseq }
  0x15   : > { %535 = vset.pattern.permute.xlu1 %v622_v2  ;;  %534 = vset.pattern.permute.xlu0 %v622_v2  ;;  %v470_v3 = vld [vmem:[%s763_s1 + $0xc] sm:$0xf]  ;;  %v468_v4 = vld [vmem:[%s763_s1 + $0x4] sm:$0xf]  ;;  %v315_v5 = vld [vmem:[%s764_s2] sm:$0xf]  ;;  %p546_p13 = pnand %p545_p12, %p684_p4 }
  0x16   : > { %279 = vperm.xlu1 %535, %v469_v0   ;;  %223 = vperm.xlu0 %534, %v201_v1   ;;  %s476_s10 = sshll.u32 %s191_s9, 3  ;;  %v204_v7 = vshrl.u32 %v203_v6, 7  ;;  %vm323_vm0 = vcmask 1043456   ;;  %s548_s8 = sshll.u32 %s623_s7, 4  ;;  %s549_s8 = int_to_ptr.vmem [resolvable:$false] %s548_s8 }
  0x17   : > { %s197_s19 = scalar_lea.vmem %s762_s0, %s476_s10  ;;  %p547_p0 = pneg %p546_p13 }
  0x18   : > { %v205_v8 = vsub.s32 0, %v204_v7  ;;  %v209_v9 = vsub.s32 4, %v204_v7  ;;  %v232_v10 = vsub.s32 1, %v204_v7  ;;  %v236_v11 = vsub.s32 5, %v204_v7  ;;  %v200_v12 = vld [vmem:[%s197_s19] sm:$0xff]  ;;  %s550_s15 = scalar_lea.vmem %s549_s8, 256  ;;  %p551_p1 = scmp.lt.s32.totalorder %s385_s28, %s549_s8 }
  0x19   : > { %v261_v13 = vsub.s32 2, %v204_v7  ;;  %v265_v14 = vsub.s32 6, %v204_v7  ;;  %v290_v15 = vsub.s32 3, %v204_v7  ;;  %v294_v16 = vsub.s32 7, %v204_v7  ;;  %p552_p2 = scmp.lt.s32.totalorder %s550_s15, %s544_s6 }
  0x1a   : > { %308 = vperm.xlu1 %535, %v470_v3   ;;  %250 = vperm.xlu0 %534, %v468_v4   ;;  %v206_v17 = vrot.slane %v200_v12, %v205_v8  ;;  %v210_v18 = vrot.slane %v200_v12, %v209_v9  ;;  %v233_v19 = vrot.slane %v200_v12, %v232_v10 }
  0x1b   : > { %v237_v20 = vrot.slane %v200_v12, %v236_v11  ;;  %v262_v21 = vrot.slane %v200_v12, %v261_v13  ;;  %v266_v22 = vrot.slane %v200_v12, %v265_v14  ;;  %v291_v25 = vrot.slane %v200_v12, %v290_v15  ;;  %p553_p3 = por %p552_p2, %p551_p1 }
  0x1c   : > { %v295_v26 = vrot.slane %v200_v12, %v294_v16  ;;  %v216_v27 = vrot.slane %v206_v17, %v205_v8  ;;  %v220_v28 = vrot.slane %v210_v18, %v205_v8  ;;  %v243_v29 = vrot.slane %v233_v19, %v232_v10 }
  0x1d   : > { %v247_v30 = vrot.slane %v237_v20, %v232_v10  ;;  %v272_v31 = vrot.slane %v262_v21, %v261_v13  ;;  %v276_v32 = vrot.slane %v266_v22, %v261_v13  ;;  %v301_v33 = vrot.slane %v291_v25, %v290_v15  ;;  %p554_p5 = pnand %p553_p3, %p547_p0 }
  0x1e   : > { %318 = vperm.xlu0 %534, %v315_v5   ;;  %v305_v34 = vrot.slane %v295_v26, %v290_v15 }
  0x91   : > { %v280_v23 = vpop.permute.xlu1 %279  ;;  %v224_v24 = vpop.permute.xlu0 %223 }
  0x92   : > { %v226_v36 = vmul.f32 %v224_v24, %v216_v27  ;;  %v227_v37 = vmul.f32 %v224_v24, %v220_v28  ;;  %v282_v41 = vmul.f32 %v280_v23, %v272_v31  ;;  %v283_v42 = vmul.f32 %v280_v23, %v276_v32 }
  0x95   : > { %v251_v35 = vpop.permute.xlu0 %250  ;;  %v309_v40 = vpop.permute.xlu1 %308 }
  0x96   : > { %v253_v38 = vmul.f32 %v251_v35, %v243_v29  ;;  %v254_v39 = vmul.f32 %v251_v35, %v247_v30  ;;  %v311_v45 = vmul.f32 %v309_v40, %v301_v33  ;;  %v312_v46 = vmul.f32 %v309_v40, %v305_v34 }
  0x98   : > { %v255_v43 = vadd.f32 %v253_v38, %v226_v36  ;;  %v256_v44 = vadd.f32 %v254_v39, %v227_v37 }
  0x99   : > { %v319_v51 = vpop.permute.xlu0 %318 }
  0x9a   : > { %v284_v47 = vadd.f32 %v282_v41, %v255_v43  ;;  %v285_v48 = vadd.f32 %v283_v42, %v256_v44 }
  0x9c   : > { %v313_v49 = vadd.f32 %v311_v45, %v284_v47  ;;  %v314_v50 = vadd.f32 %v312_v46, %v285_v48 }
  0x9e   : > { %v321_v52 = vadd.f32 %v319_v51, %v313_v49  ;;  %v322_v53 = vadd.f32 %v319_v51, %v314_v50 }
  0xa0   : > { %v324_v54 = vsel %vm323_vm0, %v321_v52, -inf  ;;  %v331_v55 = vsel %vm323_vm0, %v322_v53, -inf }
  0xa1   : > { %v325_v56 = vrot.slane %v324_v54, 4  ;;  %v332_v57 = vrot.slane %v331_v55, 4 }
  0xa3   : > { %v326_v58 = vmax.f32 %v324_v54, %v325_v56  ;;  %v333_v59 = vmax.f32 %v331_v55, %v332_v57 }
  0xa5   : > { %v327_v60 = vrot.slane %v326_v58, 2  ;;  %v334_v61 = vrot.slane %v333_v59, 2 }
  0xa7   : > { %v328_v62 = vmax.f32 %v326_v58, %v327_v60  ;;  %v335_v63 = vmax.f32 %v333_v59, %v334_v61 }
  0xa9   : > { %v329_v0 = vrot.slane %v328_v62, 1  ;;  %v336_v1 = vrot.slane %v335_v63, 1 }
  0xab   : > { %v330_v2 = vmax.f32 %v328_v62, %v329_v0  ;;  %v337_v3 = vmax.f32 %v335_v63, %v336_v1 }
  0xad   : > { %v338_v4 = vsub.f32 %v321_v52, %v330_v2  ;;  %v339_v5 = vsub.f32 %v322_v53, %v337_v3 }
  0xaf   : > { %v340_v6 = vmul.f32 1.442695, %v338_v4  ;;  %v342_v7 = vmul.f32 1.442695, %v339_v5 }
  0xb1   : > { %536 = vpow2.f32 %v340_v6 }
  0xb2   : > { %538 = vpow2.f32 %v342_v7 }
  0xbe   : > { %v537_v8 = vpop.eup %536 }
  0xbf   : > { %v539_v9 = vpop.eup %538  ;;  %v344_v10 = vsel %vm323_vm0, %v537_v8, 0.0 }
  0xc0   : > { %v345_v11 = vrot.slane %v344_v10, 4  ;;  %v351_v12 = vsel %vm323_vm0, %v539_v9, 0.0 }
  0xc1   : > { %v352_v13 = vrot.slane %v351_v12, 4 }
  0xc2   : > { %v346_v14 = vadd.f32 %v345_v11, %v344_v10 }
  0xc3   : > { %v353_v15 = vadd.f32 %v352_v13, %v351_v12 }
  0xc4   : > { %v347_v16 = vrot.slane %v346_v14, 2 }
  0xc5   : > { %v354_v17 = vrot.slane %v353_v15, 2 }
  0xc6   : > { %v348_v18 = vadd.f32 %v347_v16, %v346_v14 }
  0xc7   : > { %v355_v19 = vadd.f32 %v354_v17, %v353_v15 }
  0xc8   : > { %v349_v20 = vrot.slane %v348_v18, 1 }
  0xc9   : > { %v356_v21 = vrot.slane %v355_v19, 1 }
  0xca   : > { %v350_v22 = vadd.f32 %v349_v20, %v348_v18 }
  0xcb   : > { %v357_v23 = vadd.f32 %v356_v21, %v355_v19 }
  0xcc   : > { %540 = vrcp.f32 %v350_v22 }
  0xcd   : > { %542 = vrcp.f32 %v357_v23 }
  0xd9   : > { %v541_v24 = vpop.eup %540 }
  0xda   : > { %v543_v25 = vpop.eup %542  ;;  %v360_v26 = vmul.f32 %v541_v24, %v537_v8 }
  0xdb   : > { %v361_v27 = vmul.f32 %v543_v25, %v539_v9 }
  0xdd   : > { %v364_v28 = vcombine.low %v360_v26, %v361_v27 }
  0xdf   : > { %366 = vst [vmem:[%s188_s27] sm:$0xff] %v364_v28 }
  0xe0   : > { %557 = shalt.err (!%p554_p5)
}
  0xe1   : > { %s558_s9 = scalar_lea.hbm %s382_s4, 128  ;;  %s562_s18 = scalar_lea.hbm %s765_s3, 256 }
  0xe2   : > { %p559_p6 = scmp.ne.s32.totalorder %s382_s4, %s558_s9  ;;  %p563_p10 = scmp.lt.s32.totalorder %s382_s4, %s765_s3 }
  0xe3   : > { %p564_p11 = scmp.lt.s32.totalorder %s562_s18, %s558_s9 }
  0xe4   : > { %p560_p7 = pnand %p559_p6, %p684_p4 }
  0xe5   : > { %p565_p12 = por %p564_p11, %p563_p10 }
  0xe6   : > { %p561_p9 = pneg %p560_p7 }
  0xe8   : > { %p566_p13 = pnand %p565_p12, %p561_p9 }
  0xea   : > { %569 = shalt.err (!%p566_p13)
}
  0xeb   : > { %478 = dma.vmem_to_hbm [thread:$0]  (%p684_p4), %s385_s28, 128, %s382_s4, %s368_s5  }
  0xec PF: > { %p484_p0 = scmp.ge.s32.totalorder %s620_s17, 2  ;;  %s396_s23 = sand.u32 1, %s600_s12  }
  0xed   : > { %s397_s26 = scalar_lea.sflag [#allocation3], %s396_s23 }
  0xee   : > { %p481_p1 = pnand %p484_p0, %p691_p8 }
  0xf0   : > { %p482_p2 = pneg %p481_p1 }
  0xf2   : > { %595 = dma.done.wait (%p482_p2), %s397_s26, 128  }
  0xf3   : > { %597 = vsyncadd (%p482_p2), %s397_s26, 4294967168  ;;  %s16_s17 = sadd.s32 1, %s620_s17   ;;  %s768_s12 = smov %s604_s13 }
  0xf4   : > { %p13_p3 = scmp.ge.s32.totalorder %s16_s17, 4   ;;  %s769_s13 = smov %s608_s14 }
  0xf5   : > { %s770_s14 = smov %s697_s25  ;;  %s771_s15 = smov %s616_s16 }
  0xf6   : > { %s772_s16 = smov %s774_s20  ;;  %15 = sbr.rel (!%p13_p3) target bundleno = 4 (0x4), region = 70 }
  0xfb   :  { %402 = vsyncpa [#allocation3], 1 }
  0xfc   :  { %404 = vsyncpa [#allocation3 + $0x1], 1 }

</bundles_post_ra>
